<compile_context>
chip_gen: v5e
topology: v5e:2x2
jax: 0.10.0
libtpu: 0.0.40
codegen_flags: <defaults>
</compile_context>

<pallas_src>
import jax
import jax.numpy as jnp
from jax.experimental import pallas as pl
from jax.experimental.pallas import tpu as pltpu


_TB_MAX = 1024  # batch columns (lanes) per grid step


def _round_up(x, m):
    return ((x + m - 1) // m) * m


def _c_critic_kernel(x_ref, w1_ref, b1_ref, w2_ref, b2_ref, w3_ref, b3_ref, out_ref):
    """Fused MLP forward on one batch tile, batch-in-lanes layout.

    x_ref:  (D,  TB)  obs_act tile, feature-major (batch on lanes)
    w1_ref: (H1, D)   b1_ref: (H1, 1)
    w2_ref: (H2, H1)  b2_ref: (H2, 1)
    w3_ref: (1,  H2)  b3_ref: (1, 1) scalar in SMEM
    out_ref: (1, TB)  lane-dense softplus output row
    """
    x = x_ref[...]

    # layer 1: (H1, D) @ (D, TB) -> (H1, TB); f32 accumulation, full-lane elementwise.
    h1 = jnp.dot(w1_ref[...], x, preferred_element_type=jnp.float32) + b1_ref[...]
    h1 = jnp.maximum(h1, 0.0)

    # layer 2: (H2, H1) @ (H1, TB) -> (H2, TB)
    h2 = jnp.dot(w2_ref[...], h1, preferred_element_type=jnp.float32) + b2_ref[...]
    h2 = jnp.maximum(h2, 0.0)

    # head: (1, H2) @ (H2, TB) -> (1, TB); batch stays on lanes (lane-dense output).
    y = jnp.dot(w3_ref[...], h2, preferred_element_type=jnp.float32) + b3_ref[0, 0]

    # Softplus: log(1 + exp(y)) in numerically stable form; unmasked full-lane store.
    out_ref[...] = jnp.logaddexp(y, 0.0)


def c_critic_forward(obs_act, params):
    """Run the C_Critic forward pass.

    Args:
      obs_act: (B, obs_dim + act_dim) array (f32 or bf16, as supplied by the producer).
      params: dict in PyTorch layout:
        w1 (H1, D), b1 (H1, 1), w2 (H2, H1), b2 (H2, 1), w3 (1, H2), b3 (1, 1).
        Weights may be f32 or bf16 (cast once via prepare_params); biases f32.

    Returns:
      (B,) float32 — squeeze(-1) of the network output, like the PyTorch module.
    """
    w1, b1 = params["w1"], params["b1"]
    w2, b2 = params["w2"], params["b2"]
    w3, b3 = params["w3"], params["b3"]

    B, D = obs_act.shape
    H1 = w1.shape[0]
    H2 = w2.shape[0]

    # Batch tile on the lane axis: multiple of 128, >= 2 grid steps when B allows
    # (so both v7x TensorCores get work), capped so per-tile VMEM stays tiny.
    tb = min(_TB_MAX, max(128, _round_up(pl.cdiv(B, 2), 128)))
    num_tiles = pl.cdiv(B, tb)
    b_pad = num_tiles * tb

    # Feature-major (batch-in-lanes) view of the input, padded to a whole number of tiles.
    # TODO(synk): ideally the producer supplies obs_act feature-major already so this
    # transpose/pad does not cost an extra HBM pass.
    x_t = obs_act.T
    if b_pad != B:
        x_t = jnp.pad(x_t, ((0, 0), (0, b_pad - B)))

    itemsize = jnp.dtype(obs_act.dtype).itemsize
    w_itemsize = jnp.dtype(w1.dtype).itemsize
    weight_bytes = (w1.size + w2.size + w3.size) * w_itemsize \
        + (b1.size + b2.size + b3.size) * 4
    cost = pl.CostEstimate(
        flops=2 * b_pad * (D * H1 + H1 * H2 + H2),
        transcendentals=2 * b_pad,  # exp + log inside softplus
        bytes_accessed=b_pad * D * itemsize + b_pad * 4 + weight_bytes,
    )

    out = pl.pallas_call(
        _c_critic_kernel,
        out_shape=jax.ShapeDtypeStruct((num_tiles, 1, tb), jnp.float32),
        grid=(num_tiles,),
        in_specs=[
            pl.BlockSpec((D, tb), lambda i: (0, i)),      # obs_act tile, batch on lanes
            pl.BlockSpec((H1, D), lambda i: (0, 0)),      # weights/biases VMEM-resident
            pl.BlockSpec((H1, 1), lambda i: (0, 0)),
            pl.BlockSpec((H2, H1), lambda i: (0, 0)),
            pl.BlockSpec((H2, 1), lambda i: (0, 0)),
            pl.BlockSpec((1, H2), lambda i: (0, 0)),
            pl.BlockSpec(memory_space=pltpu.MemorySpace.SMEM),  # b3 scalar
        ],
        # Lane-dense output row per tile; leading tile dim squeezed out of the kernel ref.
        out_specs=pl.BlockSpec((None, 1, tb), lambda i: (i, 0, 0)),
        compiler_params=pltpu.CompilerParams(
            dimension_semantics=("parallel",),            # shard batch tiles across TCs
        ),
        cost_estimate=cost,
    )(x_t, w1, b1, w2, b2, w3, b3)

    # glue: drop the tile structure and the batch padding; squeeze(-1) semantics.
    return out.reshape(-1)[:B]


def prepare_params(params, weight_dtype=jnp.float32):
    """One-time (outside the step) weight dtype cast; biases stay f32."""
    out = dict(params)
    for name in ("w1", "w2", "w3"):
        out[name] = params[name].astype(weight_dtype)
    for name in ("b1", "b2", "b3"):
        out[name] = params[name].astype(jnp.float32)
    return out


def init_params(key, obs_dim, act_dim, hidden_sizes):
    """Deterministic synthetic parameter init, PyTorch nn.Linear (out, in) layout."""
    sizes = [obs_dim + act_dim] + list(hidden_sizes) + [1]
    params = {}
    keys = jax.random.split(key, 2 * (len(sizes) - 1))
    for j in range(len(sizes) - 1):
        fan_in, fan_out = sizes[j], sizes[j + 1]
        bound = 1.0 / jnp.sqrt(fan_in)
        w = jax.random.uniform(keys[2 * j], (fan_out, fan_in),
                               minval=-bound, maxval=bound, dtype=jnp.float32)
        b = jax.random.uniform(keys[2 * j + 1], (fan_out, 1),
                               minval=-bound, maxval=bound, dtype=jnp.float32)
        params[f"w{j + 1}"] = w
        params[f"b{j + 1}"] = b
    return params


def reference_forward(obs_act, params):
    """Pure-JAX reference (f32) for correctness checking."""
    obs_act = obs_act.astype(jnp.float32)
    h = jnp.maximum(obs_act @ params["w1"].astype(jnp.float32).T + params["b1"].T, 0.0)
    h = jnp.maximum(h @ params["w2"].astype(jnp.float32).T + params["b2"].T, 0.0)
    y = h @ params["w3"].astype(jnp.float32).T + params["b3"].T
    return jnp.squeeze(jnp.logaddexp(y, 0.0), axis=-1)


if __name__ == "__main__":
    obs_dim, act_dim = 12, 4
    hidden_sizes = (32, 32)

    key = jax.random.PRNGKey(0)
    k_params, k_x1, k_x2 = jax.random.split(key, 3)
    params = prepare_params(init_params(k_params, obs_dim, act_dim, hidden_sizes))

    # Small batch (single padded tile).
    batch = 8
    obs_act = jax.random.normal(k_x1, (batch, obs_dim + act_dim), dtype=jnp.float32)
    out = jax.block_until_ready(c_critic_forward(obs_act, params))
    ref = reference_forward(obs_act, params)
    assert out.shape == (batch,)
    assert jnp.allclose(out, ref, atol=1e-5, rtol=1e-5), (out, ref)

    # Batch that needs two grid steps (v7x megacore) and a padded final tile.
    batch2 = 300
    obs_act2 = jax.random.normal(k_x2, (batch2, obs_dim + act_dim), dtype=jnp.float32)
    out2 = jax.block_until_ready(c_critic_forward(obs_act2, params))
    ref2 = reference_forward(obs_act2, params)
    assert out2.shape == (batch2,)
    assert jnp.allclose(out2, ref2, atol=1e-5, rtol=1e-5), (out2, ref2)

    # bf16 streaming path: weights cast ONCE outside the forward, bf16 input as-supplied.
    params_bf16 = prepare_params(params, weight_dtype=jnp.bfloat16)
    obs_act2_bf16 = obs_act2.astype(jnp.bfloat16)   # stands in for a bf16 producer
    out_bf16 = jax.block_until_ready(c_critic_forward(obs_act2_bf16, params_bf16))
    assert out_bf16.shape == (batch2,)
    assert jnp.allclose(out_bf16, ref2, atol=5e-2, rtol=5e-2)

    # TODO(synk): `safety_correction` needs autograd w.r.t. a zero action plus
    # host-side scalar branching / NumPy projection math; only the forward pass
    # is expressed as a Pallas kernel here.
    print("KERNEL_OK")
</pallas_src>

<mosaic_0001>
module attributes {stable_mosaic.version = 11 : i64} {
  func.func @_c_critic_kernel(%arg0: i32, %arg1: memref<16x128xf32, #tpu.memory_space<vmem>>, %arg2: memref<32x16xf32, #tpu.memory_space<vmem>>, %arg3: memref<32x1xf32, #tpu.memory_space<vmem>>, %arg4: memref<32x32xf32, #tpu.memory_space<vmem>>, %arg5: memref<32x1xf32, #tpu.memory_space<vmem>>, %arg6: memref<1x32xf32, #tpu.memory_space<vmem>>, %arg7: memref<1x1xf32, #tpu.memory_space<smem>>, %arg8: memref<1x1x128xf32, #tpu.memory_space<vmem>>) attributes {dimension_semantics = [#tpu.dimension_semantics<parallel>], iteration_bounds = array<i64: 1>, scalar_prefetch = 0 : i64, scratch_operands = 0 : i64, tpu.core_type = #tpu.core_type<tc>, window_params = [{transform_indices = @transform_0, window_bounds = array<i64: 16, 128>}, {pipeline_mode = #tpu.pipeline_mode<synchronous>, transform_indices = @transform_1, window_bounds = array<i64: 32, 16>}, {pipeline_mode = #tpu.pipeline_mode<synchronous>, transform_indices = @transform_2, window_bounds = array<i64: 32, 1>}, {pipeline_mode = #tpu.pipeline_mode<synchronous>, transform_indices = @transform_3, window_bounds = array<i64: 32, 32>}, {pipeline_mode = #tpu.pipeline_mode<synchronous>, transform_indices = @transform_4, window_bounds = array<i64: 32, 1>}, {pipeline_mode = #tpu.pipeline_mode<synchronous>, transform_indices = @transform_5, window_bounds = array<i64: 1, 32>}, {transform_indices = @transform_6, window_bounds = array<i64: 1, 1>}, {transform_indices = @transform_7, window_bounds = array<i64: 1, 1, 128>}]} {
    %c0 = arith.constant 0 : index
    %c0_0 = arith.constant 0 : index
    %0 = vector.load %arg1[%c0, %c0_0] : memref<16x128xf32, #tpu.memory_space<vmem>>, vector<16x128xf32>
    %c0_1 = arith.constant 0 : index
    %c0_2 = arith.constant 0 : index
    %1 = vector.load %arg2[%c0_1, %c0_2] : memref<32x16xf32, #tpu.memory_space<vmem>>, vector<32x16xf32>
    %cst = arith.constant dense<0.000000e+00> : vector<32x128xf32>
    %2 = tpu.matmul %1, %0, %cst {dimension_numbers = #tpu.dot_dimension_numbers<[1], [0], [0], [1], [0, 0, 1, 1], [], []>} : vector<32x16xf32>, vector<16x128xf32>, vector<32x128xf32> -> vector<32x128xf32>
    %c0_3 = arith.constant 0 : index
    %c0_4 = arith.constant 0 : index
    %3 = vector.load %arg3[%c0_3, %c0_4] : memref<32x1xf32, #tpu.memory_space<vmem>>, vector<32x1xf32>
    %4 = vector.broadcast %3 : vector<32x1xf32> to vector<32x128xf32>
    %5 = arith.addf %2, %4 : vector<32x128xf32>
    %cst_5 = arith.constant 0.000000e+00 : f32
    %6 = vector.broadcast %cst_5 : f32 to vector<32x128xf32>
    %7 = arith.maximumf %5, %6 : vector<32x128xf32>
    %c0_6 = arith.constant 0 : index
    %c0_7 = arith.constant 0 : index
    %8 = vector.load %arg4[%c0_6, %c0_7] : memref<32x32xf32, #tpu.memory_space<vmem>>, vector<32x32xf32>
    %cst_8 = arith.constant dense<0.000000e+00> : vector<32x128xf32>
    %9 = tpu.matmul %8, %7, %cst_8 {dimension_numbers = #tpu.dot_dimension_numbers<[1], [0], [0], [1], [0, 0, 1, 1], [], []>} : vector<32x32xf32>, vector<32x128xf32>, vector<32x128xf32> -> vector<32x128xf32>
    %c0_9 = arith.constant 0 : index
    %c0_10 = arith.constant 0 : index
    %10 = vector.load %arg5[%c0_9, %c0_10] : memref<32x1xf32, #tpu.memory_space<vmem>>, vector<32x1xf32>
    %11 = vector.broadcast %10 : vector<32x1xf32> to vector<32x128xf32>
    %12 = arith.addf %9, %11 : vector<32x128xf32>
    %cst_11 = arith.constant 0.000000e+00 : f32
    %13 = vector.broadcast %cst_11 : f32 to vector<32x128xf32>
    %14 = arith.maximumf %12, %13 : vector<32x128xf32>
    %c0_12 = arith.constant 0 : index
    %c0_13 = arith.constant 0 : index
    %15 = vector.load %arg6[%c0_12, %c0_13] : memref<1x32xf32, #tpu.memory_space<vmem>>, vector<1x32xf32>
    %cst_14 = arith.constant dense<0.000000e+00> : vector<1x128xf32>
    %16 = tpu.matmul %15, %14, %cst_14 {dimension_numbers = #tpu.dot_dimension_numbers<[1], [0], [0], [1], [0, 0, 1, 1], [], []>} : vector<1x32xf32>, vector<32x128xf32>, vector<1x128xf32> -> vector<1x128xf32>
    %c0_15 = arith.constant 0 : index
    %c0_16 = arith.constant 0 : index
    %17 = memref.load %arg7[%c0_15, %c0_16] : memref<1x1xf32, #tpu.memory_space<smem>>
    %18 = vector.broadcast %17 : f32 to vector<1x128xf32>
    %19 = arith.addf %16, %18 : vector<1x128xf32>
    %cst_17 = arith.constant 0.000000e+00 : f32
    %20 = vector.broadcast %cst_17 : f32 to vector<1x128xf32>
    %21 = arith.maximumf %19, %20 : vector<1x128xf32>
    %22 = vector.broadcast %cst_17 : f32 to vector<1x128xf32>
    %23 = arith.subf %19, %22 : vector<1x128xf32>
    %24 = arith.cmpf one, %23, %23 : vector<1x128xf32>
    %25 = vector.broadcast %cst_17 : f32 to vector<1x128xf32>
    %26 = arith.addf %19, %25 : vector<1x128xf32>
    %27 = math.absf %23 : vector<1x128xf32>
    %cst_18 = arith.constant 0.000000e+00 : f32
    %28 = vector.broadcast %cst_18 : f32 to vector<1x128xf32>
    %29 = arith.subf %28, %27 : vector<1x128xf32>
    %30 = math.exp %29 : vector<1x128xf32>
    %31 = math.log1p %30 : vector<1x128xf32>
    %32 = arith.addf %21, %31 : vector<1x128xf32>
    %33 = arith.select %24, %26, %32 : vector<1x128xi1>, vector<1x128xf32>
    %c0_19 = arith.constant 0 : index
    %c0_20 = arith.constant 0 : index
    %c0_21 = arith.constant 0 : index
    %34 = vector.load %arg8[%c0_19, %c0_20, %c0_21] : memref<1x1x128xf32, #tpu.memory_space<vmem>>, vector<1x1x128xf32>
    %35 = vector.shape_cast %34 : vector<1x1x128xf32> to vector<1x128xf32>
    %36 = vector.shape_cast %33 : vector<1x128xf32> to vector<1x1x128xf32>
    tpu.vector_store %arg8[%c0_19, %c0_20, %c0_21], %36 {strides = array<i32>} : memref<1x1x128xf32, #tpu.memory_space<vmem>>, vector<1x1x128xf32>,
    return
  }
  func.func @transform_0(%arg0: i32) -> (i32, i32) {
    %c0_i32 = arith.constant 0 : i32
    %c0_i32_0 = arith.constant 0 : i32
    return %c0_i32, %arg0 : i32, i32
  }
  func.func @transform_1(%arg0: i32) -> (i32, i32) {
    %c0_i32 = arith.constant 0 : i32
    %c0_i32_0 = arith.constant 0 : i32
    %c0_i32_1 = arith.constant 0 : i32
    return %c0_i32, %c0_i32_0 : i32, i32
  }
  func.func @transform_2(%arg0: i32) -> (i32, i32) {
    %c0_i32 = arith.constant 0 : i32
    %c0_i32_0 = arith.constant 0 : i32
    %c0_i32_1 = arith.constant 0 : i32
    return %c0_i32, %c0_i32_0 : i32, i32
  }
  func.func @transform_3(%arg0: i32) -> (i32, i32) {
    %c0_i32 = arith.constant 0 : i32
    %c0_i32_0 = arith.constant 0 : i32
    %c0_i32_1 = arith.constant 0 : i32
    return %c0_i32, %c0_i32_0 : i32, i32
  }
  func.func @transform_4(%arg0: i32) -> (i32, i32) {
    %c0_i32 = arith.constant 0 : i32
    %c0_i32_0 = arith.constant 0 : i32
    %c0_i32_1 = arith.constant 0 : i32
    return %c0_i32, %c0_i32_0 : i32, i32
  }
  func.func @transform_5(%arg0: i32) -> (i32, i32) {
    %c0_i32 = arith.constant 0 : i32
    %c0_i32_0 = arith.constant 0 : i32
    %c0_i32_1 = arith.constant 0 : i32
    return %c0_i32, %c0_i32_0 : i32, i32
  }
  func.func @transform_6(%arg0: i32) -> (i32, i32) {
    %c0_i32 = arith.constant 0 : i32
    %c0_i32_0 = arith.constant 0 : i32
    %c0_i32_1 = arith.constant 0 : i32
    return %c0_i32, %c0_i32_0 : i32, i32
  }
  func.func @transform_7(%arg0: i32) -> (i32, i32, i32) {
    %c0_i32 = arith.constant 0 : i32
    %c0_i32_0 = arith.constant 0 : i32
    %c0_i32_1 = arith.constant 0 : i32
    return %arg0, %c0_i32, %c0_i32_0 : i32, i32, i32
  }
}

</mosaic_0001>

<bundles_post_ra>
// kernel: tpu_custom_call.1
= control target key start
LH: loop header
LB: loop body
LE: loop exit
PB: predicated region body
PF: predicated region fallthrough
CT: control target
= control target key end

     0   :  { %vm58_vm0 = vcmask 130048   ;;  %v293_v3 = vmov 0   ;;  %s407_s0 = inlined_call_operand.vmem [shape: f32[16,128], index: 0, kind: input, shape index: {}]   ;;  %s408_s1 = inlined_call_operand.vmem [shape: f32[32,16], index: 1, kind: input, shape index: {}]   ;;  %s409_s2 = inlined_call_operand.vmem [shape: f32[32,1], index: 2, kind: input, shape index: {}]   ;;  %s410_s3 = inlined_call_operand.vmem [shape: f32[32,32], index: 3, kind: input, shape index: {}]   ;;  %s411_s4 = inlined_call_operand.vmem [shape: f32[32,1], index: 4, kind: input, shape index: {}]   ;;  %s412_s5 = inlined_call_operand.vmem [shape: f32[1,32], index: 5, kind: input, shape index: {}]   ;;  %s413_s6 = inlined_call_operand.<no memory space> [shape: f32[1,1], index: 6, kind: input, shape index: {}]   ;;  %s414_s7 = inlined_call_operand.hbm [shape: f32[1,1,128], index: 7, kind: output, shape index: {}]  }
   0x1   :  { %v29_v0 = vld [vmem:[%s407_s0 + $0x8] sm:$0xff]  ;;  %v28_v1 = vld [vmem:[%s407_s0] sm:$0xff]  ;;  %261 = vset.pattern.permute.xlu1 %v293_v3  ;;  %v37_v4 = vld [vmem:[%s409_s2 + $0x18] sm:$0xff]  ;;  %260 = vset.pattern.permute.xlu0 %v293_v3 }
   0x2   :  { %85 = vmatpush.msra.mxu0 %v29_v0  ;;  %v30_v2 = vld [vmem:[%s408_s1] sm:$0xff]  ;;  %v35_v5 = vld [vmem:[%s409_s2 + $0x8] sm:$0xff]  ;;  %55 = vperm.xlu0 %260, %v37_v4   ;;  %v33_v6 = vld [vmem:[%s408_s1 + $0x18] sm:$0xff] }
   0x3   :  { %45 = vperm.xlu1 %261, %v35_v5   ;;  %248 = vmatpush.msra.mxu1 %v29_v0 }
   0x4   :  { %86 = vmatpush.msra.mxu0 %v28_v1 }
   0x5   :  { %239 = vmatmul.msk.f32.vlgmr.msra.gmra.mxu0 %vm58_vm0, %v30_v2 }
   0x6   :  { %13 = vsyncpa [#allocation4], 0  ;;  %262 = vset.pattern.permute.xlu2 %v293_v3  ;;  %249 = vmatpush.msra.mxu1 %v28_v1  ;;  %v34_v7 = vld [vmem:[%s409_s2] sm:$0xff]  ;;  %v36_v8 = vld [vmem:[%s409_s2 + $0x10] sm:$0xff]  ;;  %vm132_vm1 = vcmask 261120   ;;  %v180_v52 = vstv %s413_s6  ;;  %s230_s14 = sshll.u32 %s414_s7, 4  ;;  %s231_s14 = int_to_ptr.hbm [resolvable:$true] %s230_s14 }
   0x7   :  { %242 = vmatmul.msk.f32.vlgmr.msra.gmra.mxu1 %vm58_vm0, %v33_v6  ;;  %v31_v9 = vld [vmem:[%s408_s1 + $0x8] sm:$0xff]  ;;  %v108_v10 = vld [vmem:[%s411_s4] sm:$0xff]  ;;  %v32_v12 = vld [vmem:[%s408_s1 + $0x10] sm:$0xff] }
   0x8   :  { %v109_v11 = vld [vmem:[%s411_s4 + $0x8] sm:$0xff]  ;;  %v111_v16 = vld [vmem:[%s411_s4 + $0x18] sm:$0xff]  ;;  %v110_v21 = vld [vmem:[%s411_s4 + $0x10] sm:$0xff] }
   0x9   :  { %129 = vperm.xlu2 %262, %v111_v16   ;;  %v104_v31 = vld [vmem:[%s410_s3] sm:$0xff]  ;;  %v105_v32 = vld [vmem:[%s410_s3 + $0x8] sm:$0xff]  ;;  %v106_v33 = vld [vmem:[%s410_s3 + $0x10] sm:$0xff] }
   0xa   :  { %50 = vperm.xlu0 %260, %v36_v8   ;;  %v107_v34 = vld [vmem:[%s410_s3 + $0x18] sm:$0xff]  ;;  %v178_v51 = vld [vmem:[%s412_s5] sm:$0x1]  ;;  %s294_s5 = smov [#allocation3]  }
   0xb   :  { %40 = vperm.xlu1 %261, %v34_v7   ;;  %s228_s12 = sshll.u32 %s294_s5, 4  ;;  %s229_s12 = int_to_ptr.vmem [resolvable:$true] %s228_s12 }
   0xd   :  { %240 = vmatmul.msk.f32.gmra.mxu0 %vm58_vm0, %v31_v9 }
  0x11   :  { %124 = vperm.xlu2 %262, %v110_v21  }
  0x12   :  { %119 = vperm.xlu0 %260, %v109_v11  }
  0x13   :  { %114 = vperm.xlu1 %261, %v108_v10  }
  0x15   :  { %241 = vmatmul.msk.f32.gmra.mxu0 %vm58_vm0, %v32_v12 }
  0x63   :  { %v130_v35 = vpop.permute.xlu2 %129 }
  0x6b   :  { %v125_v37 = vpop.permute.xlu2 %124 }
  0x74   :  { %v56_v14 = vpop.permute.xlu0 %55 }
  0x75   :  { %v46_v18 = vpop.permute.xlu1 %45 }
  0x7c   :  { %v51_v23 = vpop.permute.xlu0 %50 }
  0x7d   :  { %v41_v22 = vpop.permute.xlu1 %40 }
  0x82   :  { %v88_v13 = vpop.f32.mrf.mxu0 }
  0x83   :  { %v89_v27 = vadd.f32 %v88_v13, %v41_v22 }
  0x84   :  { %v97_v15 = vpop.f32.mrf.mxu1  ;;  %v120_v42 = vpop.permute.xlu0 %119 }
  0x85   :  { %v98_v17 = vadd.f32 %v97_v15, %v56_v14  ;;  %v100_v30 = vmax.f32 %v89_v27, 0.0  ;;  %v115_v46 = vpop.permute.xlu1 %114 }
  0x87   :  { %v103_v19 = vmax.f32 %v98_v17, 0.0 }
  0x89   :  { %157 = vmatpush.msrb.mxu1 %v103_v19  ;;  %250 = vmatpush.msra.mxu2 %v103_v19 }
  0x8a   :  { %v91_v20 = vpop.f32.mrf.mxu0  ;;  %251 = vmatpush.msra.mxu3 %v103_v19 }
  0x8b   :  { %v92_v25 = vadd.f32 %v91_v20, %v46_v18 }
  0x8d   :  { %v101_v29 = vmax.f32 %v92_v25, 0.0 }
  0x92   :  { %v94_v24 = vpop.f32.mrf.mxu0 }
  0x93   :  { %v95_v26 = vadd.f32 %v94_v24, %v51_v23 }
  0x95   :  { %v102_v28 = vmax.f32 %v95_v26, 0.0 }
  0x97   :  { %158 = vmatpush.msrb.mxu1 %v102_v28  ;;  %252 = vmatpush.msra.mxu2 %v102_v28 }
  0x98   :  { %253 = vmatpush.msra.mxu3 %v102_v28 }
  0x99   :  { %159 = vmatpush.msrb.mxu1 %v101_v29  ;;  %254 = vmatpush.msra.mxu2 %v101_v29 }
  0x9a   :  { %255 = vmatpush.msra.mxu3 %v101_v29 }
  0x9b   :  { %160 = vmatpush.msrb.mxu1 %v100_v30  ;;  %256 = vmatpush.msra.mxu2 %v100_v30 }
  0x9c   :  { %257 = vmatpush.msra.mxu3 %v100_v30  ;;  %243 = vmatmul.msk.f32.vlgmr.msrb.gmra.mxu1 %vm132_vm1, %v104_v31 }
  0x9d   :  { %244 = vmatmul.msk.f32.vlgmr.msra.gmra.mxu2 %vm132_vm1, %v105_v32  ;;  %245 = vmatmul.msk.f32.vlgmr.msra.gmra.mxu3 %vm132_vm1, %v106_v33 }
  0xa5   :  { %246 = vmatmul.msk.f32.gmra.mxu3 %vm132_vm1, %v107_v34 }
 0x119   :  { %v162_v43 = vpop.f32.mrf.mxu1 }
 0x11a   :  { %v163_v47 = vadd.f32 %v162_v43, %v115_v46 }
 0x11c   :  { %v174_v50 = vmax.f32 %v163_v47, 0.0 }
 0x120   :  { %v168_v36 = vpop.f32.mrf.mxu3  ;;  %v165_v38 = vpop.f32.mrf.mxu2 }
 0x121   :  { %v169_v40 = vadd.f32 %v168_v36, %v125_v37  ;;  %v166_v44 = vadd.f32 %v165_v38, %v120_v42 }
 0x123   :  { %v176_v48 = vmax.f32 %v169_v40, 0.0  ;;  %v175_v49 = vmax.f32 %v166_v44, 0.0 }
 0x128   :  { %v171_v39 = vpop.f32.mrf.mxu3 }
 0x129   :  { %v172_v41 = vadd.f32 %v171_v39, %v130_v35 }
 0x12b   :  { %v177_v45 = vmax.f32 %v172_v41, 0.0 }
 0x12d   :  { %196 = vmatpush.msrb.mxu2 %v177_v45 }
 0x12f   :  { %197 = vmatpush.msrb.mxu2 %v176_v48 }
 0x131   :  { %198 = vmatpush.msrb.mxu2 %v175_v49 }
 0x133   :  { %199 = vmatpush.msrb.mxu2 %v174_v50 }
 0x134   :  { %247 = vmatmul.msk.f32.vlgmr.msrb.gmra.mxu2 %vm132_vm1, %v178_v51 }
 0x1b7   :  { %v201_v53 = vpop.f32.mrf.mxu2 }
 0x1b8   :  { %v202_v54 = vadd.f32 %v201_v53, %v180_v52 }
 0x1ba   :  { %v207_v55 = vand.u32 2147483647, %v202_v54  ;;  %v204_v2 = vmax.f32 %v202_v54, 0.0  ;;  %vm205_vm3 = vcmp.ne.f32.partialorder %v202_v54, %v202_v54 }
 0x1bc   :  { %v208_v56 = vsub.f32 0.0, %v207_v55 }
 0x1be   :  { %v209_v57 = vmul.f32 1.442695, %v208_v56 }
 0x1c0   :  { %263 = vpow2.f32 %v209_v57 }
 0x1c6   :  { %v264_v58 = vpop.eup %263 }
 0x1c7   :  { %v211_v59 = vadd.f32 1.0, %v264_v58  ;;  %v214_v60 = vmul.f32 -0.5, %v264_v58  ;;  %v217_v62 = vand.u32 2147483647, %v264_v58 }
 0x1c9   :  { %265 = vlog2.f32 %v211_v59  ;;  %v215_v61 = vadd.f32 1.0, %v214_v60  ;;  %vm218_vm2 = vcmp.lt.f32.partialorder %v217_v62, 0.0004427343 }
 0x1cb   :  { %v216_v1 = vmul.f32 %v264_v58, %v215_v61 }
 0x1cf   :  { %v266_v63 = vpop.eup %265 }
 0x1d0   :  { %v213_v0 = vmul.f32 0.6931472, %v266_v63 }
 0x1d2   :  { %v219_v3 = vsel %vm218_vm2, %v216_v1, %v213_v0 }
 0x1d3   :  { %v220_v4 = vadd.f32 %v219_v3, %v204_v2 }
 0x1d5   :  { %v221_v5 = vsel %vm205_vm3, %v202_v54, %v220_v4 }
 0x1d6   :  { %222 = vst [vmem:[#allocation3] sm:$0x1] %v221_v5 }
 0x1d7   :  { %233 = dma.vmem_to_hbm [thread:$0]  %s229_s12, 16, %s231_s14, [#allocation4]  }
 0x1d8   :  { %291 = dma.done.wait [#allocation4], 16  }
 0x1d9   :  { %292 = vsyncadd [#allocation4], 4294967280 }
 0x1da   :  { %238 = vsyncpa [#allocation4], 1 }

</bundles_post_ra>
